<compile_context>
chip_gen: v5e
topology: v5e:2x2
jax: 0.10.0
libtpu: 0.0.40
codegen_flags: <defaults>
</compile_context>

<pallas_src>
import functools

import jax
import jax.numpy as jnp
from jax.experimental import pallas as pl
from jax.experimental.pallas import tpu as pltpu


# ---------------------------------------------------------------------------
# Hardware-aware sizing helpers
# ---------------------------------------------------------------------------

def _tpu_limits():
    """Returns (vmem_capacity_bytes, num_tensorcores) with safe fallbacks."""
    vmem_cap = 64 << 20      # v7x per-TC capacity; safe lower bound everywhere
    num_tc = 1
    try:
        info = pltpu.get_tpu_info()
        cap = int(getattr(info, "vmem_capacity_bytes", 0) or 0)
        if cap > 0:
            vmem_cap = cap
        for attr in ("num_cores", "num_tensorcores", "core_count"):
            v = getattr(info, attr, None)
            if v:
                num_tc = int(v)
                break
    except Exception:
        pass
    return max(vmem_cap, 32 << 20), max(1, num_tc)


def _pick_tb(B, per_elem_bytes, target_bytes, max_bytes, num_tc):
    """Batch elements fused per grid step: target ~target_bytes blocks, never
    exceed max_bytes, keep >= num_tc steps only when the chip has >1 TC, and
    require TB | B."""
    budget = max(1, min(target_bytes, max_bytes))
    tb = max(1, int(budget // max(1, per_elem_bytes)))
    tb = min(tb, B)
    if num_tc > 1 and B >= num_tc and B // tb < num_tc:
        tb = max(1, B // num_tc)
    while B % tb != 0:
        tb -= 1
    return tb


def _pick_cc(C, HW, itemsize, budget_bytes):
    """Largest channel chunk that is a multiple of 8, divides C, and whose
    (1, Cc, HW) slab fits the budget.  None if no such chunk exists."""
    cap = max(8, int(budget_bytes // max(1, HW * itemsize)))
    cc = (min(C, cap) // 8) * 8
    while cc >= 8:
        if C % cc == 0:
            return cc
        cc -= 8
    return None


# ---------------------------------------------------------------------------
# Kernels
# ---------------------------------------------------------------------------

def _cam_fused_kernel(x_ref, w1t_ref, b1_ref, w2t_ref, b2_ref, o_ref, *, inv_hw):
    # x_ref:   (TB, C, HW)   o_ref: (TB, C, HW)
    # w1t_ref: (C, Cr)  b1_ref: (1, Cr)  w2t_ref: (Cr, C)  b2_ref: (1, C)
    #
    # Global average pool over the spatial (lane) axis with f32 accumulation;
    # no full-block f32 temporary is materialized.
    y = jnp.sum(x_ref[...], axis=-1, dtype=jnp.float32) * inv_hw        # (TB, C)

    # fc1 + ReLU, fc2 (tiny MXU matmuls, negligible vs. the HBM traffic).
    h = jnp.dot(y, w1t_ref[...], preferred_element_type=jnp.float32) + b1_ref[...]
    h = jnp.maximum(h, 0.0)
    s = jnp.dot(h, w2t_ref[...], preferred_element_type=jnp.float32) + b2_ref[...]
    s = jax.nn.sigmoid(s)                                                # (TB, C) f32

    # Sigmoid gate broadcast over the spatial axis, multiplied in the native
    # activation dtype.  Re-read x from the resident VMEM buffer rather than
    # keeping the whole block live across the FC section.
    gate = s.astype(o_ref.dtype)[:, :, None]                             # (TB, C, 1)
    o_ref[...] = (x_ref[...] * gate).astype(o_ref.dtype)


def _cam_pool_kernel(x_ref, y_ref, *, inv_hw):
    # x_ref: (1, Cc, HW) -> y_ref: (1, Cc, 1) f32 channel means.
    y_ref[...] = jnp.sum(x_ref[...], axis=-1, keepdims=True,
                         dtype=jnp.float32) * inv_hw


def _cam_gate_kernel(x_ref, g_ref, o_ref):
    # x_ref: (1, Cc, HW), g_ref: (1, Cc, 1) already in activation dtype.
    o_ref[...] = (x_ref[...] * g_ref[...]).astype(o_ref.dtype)


# ---------------------------------------------------------------------------
# Wrapper
# ---------------------------------------------------------------------------

@functools.partial(jax.jit, static_argnames=("force_split",))
def cam_forward(x, w1, b1, w2, b2, *, force_split=False):
    """x: (B, C, H, W).  w1: (C//r, C), b1: (C//r,), w2: (C, C//r), b2: (C,).

    Matches CAM.forward with quantize=False.
    """
    B, C, H, W = x.shape
    Cr = w1.shape[0]
    HW = H * W
    itemsize = jnp.dtype(x.dtype).itemsize

    # No lane padding: full-extent HW block + masked in-kernel tail stores is
    # far cheaper than an extra pad + slice HBM pass each.
    x_flat = x.reshape(B, C, HW)

    vmem_cap, num_tc = _tpu_limits()
    # Stay well below the physical per-core VMEM: ~56 MiB on a 64 MiB chip
    # (v7x), capped at 100 MiB on 128 MiB chips (v5e/v6e).
    vmem_ceiling = int(min(100 << 20, vmem_cap - (8 << 20)))
    target_block = (12 << 20) if vmem_cap >= (100 << 20) else (7 << 20)

    weight_bytes = 4 * (2 * C * Cr + C + Cr)
    headroom = 4 << 20
    max_block = max(1 << 20, (vmem_ceiling - weight_bytes - headroom) // 4)

    per_elem = C * HW * itemsize

    # Pre-transpose weights / lay biases out as rows: no in-kernel transposes,
    # weights kept in their native dtype (MXU accumulates in f32).
    w1t = jnp.transpose(w1)                    # (C, Cr)
    w2t = jnp.transpose(w2)                    # (Cr, C)
    b1_row = b1.reshape(1, Cr).astype(jnp.float32)
    b2_row = b2.reshape(1, C).astype(jnp.float32)
    inv_hw = 1.0 / float(HW)

    use_split = force_split or (per_elem > max_block)

    if not use_split:
        # ---- fused single-pass path -------------------------------------
        TB = _pick_tb(B, per_elem, target_block, max_block, num_tc)
        block_bytes = TB * per_elem
        vmem_limit = int(min(vmem_ceiling,
                             max(16 << 20,
                                 4 * block_bytes + 2 * weight_bytes + headroom)))
        kernel = functools.partial(_cam_fused_kernel, inv_hw=inv_hw)
        out_flat = pl.pallas_call(
            kernel,
            out_shape=jax.ShapeDtypeStruct((B, C, HW), x.dtype),
            grid_spec=pl.GridSpec(
                grid=(B // TB,),
                in_specs=[
                    pl.BlockSpec((TB, C, HW), lambda b: (b, 0, 0)),
                    pl.BlockSpec((C, Cr), lambda b: (0, 0)),
                    pl.BlockSpec((1, Cr), lambda b: (0, 0)),
                    pl.BlockSpec((Cr, C), lambda b: (0, 0)),
                    pl.BlockSpec((1, C), lambda b: (0, 0)),
                ],
                out_specs=pl.BlockSpec((TB, C, HW), lambda b: (b, 0, 0)),
            ),
            compiler_params=pltpu.CompilerParams(
                dimension_semantics=("parallel",),
                vmem_limit_bytes=vmem_limit,
            ),
        )(x_flat, w1t, b1_row, w2t, b2_row)
        return out_flat.reshape(B, C, H, W)

    # ---- split two-pass path (single batch element too big for VMEM) ----
    cc = _pick_cc(C, HW, itemsize, min(target_block, max_block))
    if cc is None:
        # TODO(synk): huge C*HW with C not divisible by 8 — no clean chunked
        # Pallas tiling; fall back to plain JAX ops for this unrealistic case.
        y = jnp.mean(x_flat, axis=-1, dtype=jnp.float32)
        h = jnp.maximum(jnp.dot(y, w1t.astype(jnp.float32)) + b1_row, 0.0)
        s = jax.nn.sigmoid(jnp.dot(h, w2t.astype(jnp.float32)) + b2_row)
        out_flat = x_flat * s.astype(x.dtype)[:, :, None]
        return out_flat.reshape(B, C, H, W)

    chunk_bytes = cc * HW * itemsize
    vmem_limit = int(min(vmem_ceiling,
                         max(16 << 20, 4 * chunk_bytes + headroom)))
    grid = (B, C // cc)

    # Pass 1: channel means.
    pooled = pl.pallas_call(
        functools.partial(_cam_pool_kernel, inv_hw=inv_hw),
        out_shape=jax.ShapeDtypeStruct((B, C, 1), jnp.float32),
        grid_spec=pl.GridSpec(
            grid=grid,
            in_specs=[pl.BlockSpec((1, cc, HW), lambda b, c: (b, c, 0))],
            out_specs=pl.BlockSpec((1, cc, 1), lambda b, c: (b, c, 0)),
        ),
        compiler_params=pltpu.CompilerParams(
            dimension_semantics=("parallel", "parallel"),
            vmem_limit_bytes=vmem_limit,
        ),
    )(x_flat)

    # Tiny FCs + sigmoid on (B, C): negligible next to the streaming passes.
    y = pooled[..., 0]                                                    # (B, C)
    h = jnp.maximum(jnp.dot(y, w1t, preferred_element_type=jnp.float32) + b1_row, 0.0)
    s = jax.nn.sigmoid(jnp.dot(h, w2t, preferred_element_type=jnp.float32) + b2_row)
    gate = s.astype(x.dtype)[:, :, None]                                  # (B, C, 1)

    # Pass 2: apply the gate, chunked over channels.
    out_flat = pl.pallas_call(
        _cam_gate_kernel,
        out_shape=jax.ShapeDtypeStruct((B, C, HW), x.dtype),
        grid_spec=pl.GridSpec(
            grid=grid,
            in_specs=[
                pl.BlockSpec((1, cc, HW), lambda b, c: (b, c, 0)),
                pl.BlockSpec((1, cc, 1), lambda b, c: (b, c, 0)),
            ],
            out_specs=pl.BlockSpec((1, cc, HW), lambda b, c: (b, c, 0)),
        ),
        compiler_params=pltpu.CompilerParams(
            dimension_semantics=("parallel", "parallel"),
            vmem_limit_bytes=vmem_limit,
        ),
    )(x_flat, gate)
    return out_flat.reshape(B, C, H, W)


# ---------------------------------------------------------------------------
# Pure-JAX reference (mirrors the PyTorch forward, quantize=False)
# ---------------------------------------------------------------------------

def cam_reference(x, w1, b1, w2, b2):
    y = jnp.mean(x, axis=(2, 3))                       # adaptive_avg_pool2d -> (B, C)
    y = y @ w1.T + b1                                  # fc1
    y = jnp.maximum(y, 0.0)                            # relu
    y = y @ w2.T + b2                                  # fc2
    y = jax.nn.sigmoid(y)[:, :, None, None]            # sigmoid + view
    return x * y                                       # expand_as + multiply


if __name__ == "__main__":
    key = jax.random.PRNGKey(0)

    def make_case(k, B, C, H, W, r):
        Cr = C // r
        kx, kw1, kb1, kw2, kb2 = jax.random.split(k, 5)
        x = jax.random.normal(kx, (B, C, H, W), dtype=jnp.float32)
        w1 = jax.random.normal(kw1, (Cr, C), dtype=jnp.float32) * 0.1   # fc1.weight
        b1 = jax.random.normal(kb1, (Cr,), dtype=jnp.float32) * 0.1     # fc1.bias
        w2 = jax.random.normal(kw2, (C, Cr), dtype=jnp.float32) * 0.1   # fc2.weight
        b2 = jax.random.normal(kb2, (C,), dtype=jnp.float32) * 0.1      # fc2.bias
        return x, w1, b1, w2, b2

    k1, k2, k3 = jax.random.split(key, 3)

    # Case 1: 128-aligned spatial size (16x16 = 256 lanes), fused path.
    args1 = make_case(k1, 2, 8, 16, 16, 2)
    out1 = jax.block_until_ready(cam_forward(*args1))
    ref1 = cam_reference(*args1)
    assert out1.shape == args1[0].shape
    assert jnp.allclose(out1, ref1, atol=1e-5, rtol=1e-5), "case1 mismatch"

    # Case 2: awkward spatial size (14x14 = 196 lanes) — no padding, masked
    # tail stores inside the kernel.
    args2 = make_case(k2, 2, 8, 14, 14, 2)
    out2 = jax.block_until_ready(cam_forward(*args2))
    ref2 = cam_reference(*args2)
    assert out2.shape == args2[0].shape
    assert jnp.allclose(out2, ref2, atol=1e-5, rtol=1e-5), "case2 mismatch"

    # Case 3: exercise the two-pass (pool + gate) fallback path.
    args3 = make_case(k3, 2, 16, 12, 12, 2)
    out3 = jax.block_until_ready(cam_forward(*args3, force_split=True))
    ref3 = cam_reference(*args3)
    assert out3.shape == args3[0].shape
    assert jnp.allclose(out3, ref3, atol=1e-5, rtol=1e-5), "case3 mismatch"

    print("KERNEL_OK")
</pallas_src>

<mosaic_0001>
module attributes {stable_mosaic.version = 11 : i64} {
  func.func @_cam_fused_kernel(%arg0: i32, %arg1: memref<2x8x256xf32, #tpu.memory_space<vmem>>, %arg2: memref<8x4xf32, #tpu.memory_space<vmem>>, %arg3: memref<1x4xf32, #tpu.memory_space<vmem>>, %arg4: memref<4x8xf32, #tpu.memory_space<vmem>>, %arg5: memref<1x8xf32, #tpu.memory_space<vmem>>, %arg6: memref<2x8x256xf32, #tpu.memory_space<vmem>>) attributes {dimension_semantics = [#tpu.dimension_semantics<parallel>], iteration_bounds = array<i64: 1>, scalar_prefetch = 0 : i64, scratch_operands = 0 : i64, tpu.core_type = #tpu.core_type<tc>, window_params = [{transform_indices = @transform_0, window_bounds = array<i64: 2, 8, 256>}, {pipeline_mode = #tpu.pipeline_mode<synchronous>, transform_indices = @transform_1, window_bounds = array<i64: 8, 4>}, {pipeline_mode = #tpu.pipeline_mode<synchronous>, transform_indices = @transform_2, window_bounds = array<i64: 1, 4>}, {pipeline_mode = #tpu.pipeline_mode<synchronous>, transform_indices = @transform_3, window_bounds = array<i64: 4, 8>}, {pipeline_mode = #tpu.pipeline_mode<synchronous>, transform_indices = @transform_4, window_bounds = array<i64: 1, 8>}, {transform_indices = @transform_5, window_bounds = array<i64: 2, 8, 256>}]} {
    %c0 = arith.constant 0 : index
    %c0_0 = arith.constant 0 : index
    %c0_1 = arith.constant 0 : index
    %0 = vector.load %arg1[%c0, %c0_0, %c0_1] : memref<2x8x256xf32, #tpu.memory_space<vmem>>, vector<2x8x256xf32>
    %cst = arith.constant dense<0.000000e+00> : vector<2x8xf32>
    %1 = vector.multi_reduction <add>, %0, %cst [2] : vector<2x8x256xf32> to vector<2x8xf32>
    %cst_2 = arith.constant 3.906250e-03 : f32
    %2 = vector.broadcast %cst_2 : f32 to vector<2x8xf32>
    %3 = arith.mulf %1, %2 : vector<2x8xf32>
    %c0_3 = arith.constant 0 : index
    %c0_4 = arith.constant 0 : index
    %4 = vector.load %arg2[%c0_3, %c0_4] : memref<8x4xf32, #tpu.memory_space<vmem>>, vector<8x4xf32>
    %cst_5 = arith.constant dense<0.000000e+00> : vector<2x4xf32>
    %5 = tpu.matmul %3, %4, %cst_5 {dimension_numbers = #tpu.dot_dimension_numbers<[1], [0], [0], [1], [0, 0, 1, 1], [], []>} : vector<2x8xf32>, vector<8x4xf32>, vector<2x4xf32> -> vector<2x4xf32>
    %c0_6 = arith.constant 0 : index
    %c0_7 = arith.constant 0 : index
    %6 = vector.load %arg3[%c0_6, %c0_7] : memref<1x4xf32, #tpu.memory_space<vmem>>, vector<1x4xf32>
    %7 = vector.broadcast %6 : vector<1x4xf32> to vector<2x4xf32>
    %8 = arith.addf %5, %7 : vector<2x4xf32>
    %cst_8 = arith.constant 0.000000e+00 : f32
    %9 = vector.broadcast %cst_8 : f32 to vector<2x4xf32>
    %10 = arith.maximumf %8, %9 : vector<2x4xf32>
    %c0_9 = arith.constant 0 : index
    %c0_10 = arith.constant 0 : index
    %11 = vector.load %arg4[%c0_9, %c0_10] : memref<4x8xf32, #tpu.memory_space<vmem>>, vector<4x8xf32>
    %cst_11 = arith.constant dense<0.000000e+00> : vector<2x8xf32>
    %12 = tpu.matmul %10, %11, %cst_11 {dimension_numbers = #tpu.dot_dimension_numbers<[1], [0], [0], [1], [0, 0, 1, 1], [], []>} : vector<2x4xf32>, vector<4x8xf32>, vector<2x8xf32> -> vector<2x8xf32>
    %c0_12 = arith.constant 0 : index
    %c0_13 = arith.constant 0 : index
    %13 = vector.load %arg5[%c0_12, %c0_13] : memref<1x8xf32, #tpu.memory_space<vmem>>, vector<1x8xf32>
    %14 = vector.broadcast %13 : vector<1x8xf32> to vector<2x8xf32>
    %15 = arith.addf %12, %14 : vector<2x8xf32>
    %16 = arith.negf %15 : vector<2x8xf32>
    %17 = math.exp %16 : vector<2x8xf32>
    %cst_14 = arith.constant 1.000000e+00 : f32
    %18 = vector.broadcast %cst_14 : f32 to vector<2x8xf32>
    %19 = arith.addf %18, %17 : vector<2x8xf32>
    %20 = arith.divf %18, %19 : vector<2x8xf32>
    %21 = vector.shape_cast %20 : vector<2x8xf32> to vector<2x8x1xf32>
    %c0_15 = arith.constant 0 : index
    %c0_16 = arith.constant 0 : index
    %c0_17 = arith.constant 0 : index
    %22 = vector.load %arg1[%c0_15, %c0_16, %c0_17] : memref<2x8x256xf32, #tpu.memory_space<vmem>>, vector<2x8x256xf32>
    %23 = vector.broadcast %21 : vector<2x8x1xf32> to vector<2x8x256xf32>
    %24 = arith.mulf %22, %23 : vector<2x8x256xf32>
    %c0_18 = arith.constant 0 : index
    %c0_19 = arith.constant 0 : index
    %c0_20 = arith.constant 0 : index
    %25 = vector.load %arg6[%c0_18, %c0_19, %c0_20] : memref<2x8x256xf32, #tpu.memory_space<vmem>>, vector<2x8x256xf32>
    tpu.vector_store %arg6[%c0_18, %c0_19, %c0_20], %24 {strides = array<i32>} : memref<2x8x256xf32, #tpu.memory_space<vmem>>, vector<2x8x256xf32>,
    return
  }
  func.func @transform_0(%arg0: i32) -> (i32, i32, i32) {
    %c0_i32 = arith.constant 0 : i32
    %c0_i32_0 = arith.constant 0 : i32
    %c0_i32_1 = arith.constant 0 : i32
    return %arg0, %c0_i32, %c0_i32_0 : i32, i32, i32
  }
  func.func @transform_1(%arg0: i32) -> (i32, i32) {
    %c0_i32 = arith.constant 0 : i32
    %c0_i32_0 = arith.constant 0 : i32
    %c0_i32_1 = arith.constant 0 : i32
    return %c0_i32, %c0_i32_0 : i32, i32
  }
  func.func @transform_2(%arg0: i32) -> (i32, i32) {
    %c0_i32 = arith.constant 0 : i32
    %c0_i32_0 = arith.constant 0 : i32
    %c0_i32_1 = arith.constant 0 : i32
    return %c0_i32, %c0_i32_0 : i32, i32
  }
  func.func @transform_3(%arg0: i32) -> (i32, i32) {
    %c0_i32 = arith.constant 0 : i32
    %c0_i32_0 = arith.constant 0 : i32
    %c0_i32_1 = arith.constant 0 : i32
    return %c0_i32, %c0_i32_0 : i32, i32
  }
  func.func @transform_4(%arg0: i32) -> (i32, i32) {
    %c0_i32 = arith.constant 0 : i32
    %c0_i32_0 = arith.constant 0 : i32
    %c0_i32_1 = arith.constant 0 : i32
    return %c0_i32, %c0_i32_0 : i32, i32
  }
  func.func @transform_5(%arg0: i32) -> (i32, i32, i32) {
    %c0_i32 = arith.constant 0 : i32
    %c0_i32_0 = arith.constant 0 : i32
    %c0_i32_1 = arith.constant 0 : i32
    return %arg0, %c0_i32, %c0_i32_0 : i32, i32, i32
  }
}

</mosaic_0001>

<bundles_post_ra>
// kernel: cam_forward.1
= control target key start
LH: loop header
LB: loop body
LE: loop exit
PB: predicated region body
PF: predicated region fallthrough
CT: control target
= control target key end

     0   :  { %v39_v8 = vlaneseq  ;;  %vm43_vm0 = vcmask 1041409   ;;  %vm45_vm1 = vcmask 64512   ;;  %vm78_vm2 = vcmask 1043456   ;;  %s241_s0 = inlined_call_operand.vmem [shape: f32[2,8,256], index: 0, kind: input, shape index: {}]   ;;  %s242_s2 = inlined_call_operand.vmem [shape: f32[1,4], index: 2, kind: input, shape index: {}]   ;;  %s243_s1 = inlined_call_operand.vmem [shape: f32[8,4], index: 1, kind: input, shape index: {}]   ;;  %s244_s4 = inlined_call_operand.vmem [shape: f32[1,8], index: 4, kind: input, shape index: {}]   ;;  %s245_s3 = inlined_call_operand.vmem [shape: f32[4,8], index: 3, kind: input, shape index: {}]   ;;  %s246_s5 = inlined_call_operand.vmem [shape: f32[2,8,256], index: 5, kind: output, shape index: {}]  }
   0x1   :  { %v192_v0 = vld [vmem:[%s241_s0] sm:$0xff]  ;;  %v197_v1 = vld [vmem:[%s241_s0 + $0x8] sm:$0xff]  ;;  %v204_v3 = vld [vmem:[%s241_s0 + $0x10] sm:$0xff]  ;;  %vm74_vm3 = vcmask 31744  }
   0x2   :  { %v24_v2 = vadd.f32 %v197_v1, %v192_v0  ;;  %v209_v4 = vld [vmem:[%s241_s0 + $0x18] sm:$0xff]  ;;  %v32_v6 = vld [vmem:[%s243_s1] sm:$0xff]  ;;  %v40_v9 = vand.u32 127, %v39_v8  ;;  %v123_v21 = vshrl.u32 %v39_v8, 7 }
   0x3   :  { %v27_v5 = vadd.f32 %v209_v4, %v204_v3  ;;  %63 = vmatpush.msra.mxu0 %v32_v6  ;;  %v69_v16 = vld [vmem:[%s245_s3] sm:$0xf] }
   0x4   :  { %25 = vadd.xlane.f32.xlu0 %v24_v2  ;;  %148 = vmatpush.msk.msra.mxu1 %vm78_vm2, %v69_v16  ;;  %v153_v17 = vld [vmem:[%s242_s2] ss:$0 sm:$0xff] }
   0x5   :  { %151 = vset.pattern.permute.xlu1 %v123_v21  ;;  %152 = vset.pattern.permute.xlu0 %v123_v21  ;;  %v154_v22 = vld [vmem:[%s244_s4] ss:$0 sm:$0xff] }
   0xc   :  { %28 = vadd.xlane.f32.xlu0 %v27_v5 }
  0x77   :  { %v26_v7 = vpop.xlane.xlu0 %25 }
  0x78   :  { %v30_v10 = vmul.f32 0.00390625, %v26_v7 }
  0x7a   :  { %v41_v13 = vperm.slane %v30_v10, %v40_v9 }
  0x7f   :  { %v29_v11 = vpop.xlane.xlu0 %28 }
  0x80   :  { %v31_v12 = vmul.f32 0.00390625, %v29_v11 }
  0x82   :  { %v42_v14 = vperm.slane %v31_v12, %v40_v9 }
  0x84   :  { %v44_v15 = vsel %vm43_vm0, %v42_v14, %v41_v13 }
  0x85   :  { %147 = vmatmul.msk.f32.vlgmr.msra.gmra.mxu0 %vm45_vm1, %v44_v15 }
 0x102   :  { %v65_v18 = vpop.f32.mrf.mxu0 }
 0x103   :  { %v66_v19 = vadd.f32 %v153_v17, %v65_v18 }
 0x105   :  { %v68_v20 = vmax.f32 %v66_v19, 0.0 }
 0x107   :  { %149 = vmatmul.msk.f32.vlgmr.msra.gmra.mxu1 %vm74_vm3, %v68_v20 }
 0x184   :  { %v99_v23 = vpop.f32.mrf.mxu1 }
 0x185   :  { %v100_v24 = vadd.f32 %v154_v22, %v99_v23 }
 0x187   :  { %v150_v25 = vmul.f32 -1.442695, %v100_v24 }
 0x189   :  { %155 = vpow2.f32 %v150_v25 }
 0x18f   :  { %v156_v26 = vpop.eup %155 }
 0x190   :  { %v105_v27 = vadd.f32 1.0, %v156_v26 }
 0x192   :  { %157 = vrcp.f32 %v105_v27  ;;  %v117_v31 = vand.u32 2147483648, %v105_v27  ;;  %v115_v33 = vand.u32 2147483647, %v105_v27  ;;  %vm111_vm5 = vweird.f32 %v105_v27 }
 0x194   :  { %v118_v35 = vor.u32 1.1754944e-38, %v117_v31  ;;  %vm116_vm7 = vcmp.eq.f32.partialorder %v115_v33, 8.507059e+37 }
 0x198   :  { %v158_v28 = vpop.eup %157 }
 0x199   :  { %v107_v29 = vmul.f32 %v158_v28, %v105_v27  ;;  %vm112_vm4 = vweird.f32 %v158_v28 }
 0x19a   :  { %vm113_vm6 = vmor %vm111_vm5, %vm112_vm4 }
 0x19b   :  { %v108_v30 = vsub.f32 1.0, %v107_v29 }
 0x19d   :  { %v109_v32 = vmul.f32 %v158_v28, %v108_v30 }
 0x19f   :  { %v110_v34 = vadd.f32 %v158_v28, %v109_v32 }
 0x1a1   :  { %v114_v36 = vsel %vm113_vm6, %v158_v28, %v110_v34 }
 0x1a2   :  { %v119_v37 = vsel %vm116_vm7, %v118_v35, %v114_v36 }
 0x1a3   :  { %v121_v38 = vperm.slane %v119_v37, 0  ;;  %v128_v39 = vperm.slane %v119_v37, 1 }
 0x1a5   :  { %126 = vperm.xlu1 %151, %v121_v38  }
 0x1ad   :  { %133 = vperm.xlu1 %151, %v128_v39  }
 0x217   :  { %v127_v40 = vpop.permute.xlu1 %126 }
 0x218   :  { %v135_v41 = vmul.f32 %v127_v40, %v192_v0  ;;  %v136_v42 = vmul.f32 %v127_v40, %v197_v1 }
 0x21a   :  { %139 = vst [vmem:[%s246_s5] sm:$0xff] %v135_v41 }
 0x21b   :  { %140 = vst [vmem:[%s246_s5 + $0x8] sm:$0xff] %v136_v42 }
 0x21f   :  { %v134_v43 = vpop.permute.xlu1 %133 }
 0x220   :  { %v137_v44 = vmul.f32 %v134_v43, %v204_v3  ;;  %v138_v45 = vmul.f32 %v134_v43, %v209_v4 }
 0x222   :  { %141 = vst [vmem:[%s246_s5 + $0x10] sm:$0xff] %v137_v44 }
 0x223   :  { %142 = vst [vmem:[%s246_s5 + $0x18] sm:$0xff] %v138_v45 }

</bundles_post_ra>
